<compile_context>
chip_gen: v6e
topology: v6e:2x2x1
jax: 0.10.0
libtpu: 0.0.40
codegen_flags: <defaults>
</compile_context>

<pallas_src>
import jax
import jax.numpy as jnp
from jax.experimental import pallas as pl
from jax.experimental.pallas import tpu as pltpu

# ---- model dims (consistent with MixerBlock.__init__) ----
B = 2            # batch
S = 8            # seq_len
H = 32           # hidden_dim
T = 16           # tokens_mlp_dim
C = 64           # channels_mlp_dim
R = 4            # r_se  -> SE bottleneck = S // R = 2
EPS = 1e-5       # nn.LayerNorm default eps

SR = S // R      # 2
BT = B * T       # 32
BS = B * S       # 16
BSR = B * SR     # 4

# ---- packed-parameter slab layout: (row, col) offsets into a (136,128) slab ----
LANES = 128
NROWS = 136                       # 68 KiB, single lane-dense DMA
R_WC1, C_WC1 = 0, 0               # (H, C)    = (32, 64)  channel fc1 (in,out)
R_B1,  C_B1  = 0, 64              # (BT, H)   = (32, 32)  token fc1 bias, pre-broadcast, batch-tiled
R_WC2, C_WC2 = 32, 0              # (C, H)    = (64, 32)  channel fc2 (in,out)
R_BC1, C_BC1 = 32, 64             # (BS, C)   = (16, 64)  channel fc1 bias, pre-broadcast
R_B2,  C_B2  = 48, 64             # (BS, H)   = (16, 32)  token fc2 bias, pre-broadcast, batch-tiled
R_BC2, C_BC2 = 64, 64             # (BS, H)   = (16, 32)  channel fc2 bias, pre-broadcast
R_W2,  C_W2  = 80, 64             # (BS, BT)  = (16, 32)  token fc2 weight, block-diag
R_W1,  C_W1  = 96, 0              # (BT, BS)  = (32, 16)  token fc1 weight, block-diag
R_SE1, C_SE1 = 96, 64             # (BS, BSR) = (16, 4)   SE fc1 weight, pre-transposed, block-diag
R_SE2, C_SE2 = 112, 64            # (BS, BSR) = (16, 4)   SE fc2 weight, block-diag
R_LN1G, R_LN1B, R_LN2G, R_LN2B = 128, 129, 130, 131   # each (1, H) at lane 0


def mixer_block_kernel(x_ref, w_ref, o_ref):
    # ---- unpack the packed parameter slab (all offsets static) ----
    wc1   = w_ref[R_WC1:R_WC1 + H,   C_WC1:C_WC1 + C]       # (H, C)
    b1    = w_ref[R_B1:R_B1 + BT,    C_B1:C_B1 + H]         # (BT, H)
    wc2   = w_ref[R_WC2:R_WC2 + C,   C_WC2:C_WC2 + H]       # (C, H)
    bc1   = w_ref[R_BC1:R_BC1 + BS,  C_BC1:C_BC1 + C]       # (BS, C)
    b2    = w_ref[R_B2:R_B2 + BS,    C_B2:C_B2 + H]         # (BS, H)
    bc2   = w_ref[R_BC2:R_BC2 + BS,  C_BC2:C_BC2 + H]       # (BS, H)
    w2    = w_ref[R_W2:R_W2 + BS,    C_W2:C_W2 + BT]        # (BS, BT) block-diag
    w1    = w_ref[R_W1:R_W1 + BT,    C_W1:C_W1 + BS]        # (BT, BS) block-diag
    wse1t = w_ref[R_SE1:R_SE1 + BS,  C_SE1:C_SE1 + BSR]     # (BS, BSR) block-diag
    wse2  = w_ref[R_SE2:R_SE2 + BS,  C_SE2:C_SE2 + BSR]     # (BS, BSR) block-diag
    ln1g  = w_ref[R_LN1G:R_LN1G + 1, 0:H]                   # (1, H)
    ln1b  = w_ref[R_LN1B:R_LN1B + 1, 0:H]
    ln2g  = w_ref[R_LN2G:R_LN2G + 1, 0:H]
    ln2b  = w_ref[R_LN2B:R_LN2B + 1, 0:H]

    x = x_ref[...]                                           # (BS, H)

    def layernorm(v, g, b):                                  # g, b: (1, H)
        mu = jnp.mean(v, axis=-1, keepdims=True)
        d = v - mu
        var = jnp.mean(d * d, axis=-1, keepdims=True)
        return d * jax.lax.rsqrt(var + EPS) * g + b

    def gelu(v):
        # tanh-approx GELU (EUP tanh; within the 2e-3 tolerance at this scale)
        return 0.5 * v * (1.0 + jnp.tanh(0.7978845608028654 *
                                         (v + 0.044715 * v * v * v)))

    def sigmoid(v):
        # exact: sigmoid(v) = 0.5 * (1 + tanh(v/2))  -> single EUP tanh
        return 0.5 * (1.0 + jnp.tanh(0.5 * v))

    def se_gate(pooled):                                     # (BS, 1) -> (BS, 1)
        # block-diagonal SE weights -> whole batch in one pass, no transposes
        e1 = jnp.sum(wse1t * pooled, axis=0, keepdims=True)  # (1, BSR)
        e1 = jnp.maximum(e1, 0.0)
        e2 = jnp.sum(wse2 * e1, axis=1, keepdims=True)       # (BS, 1)
        return sigmoid(e2)

    # ---- LN1 + token mixing: whole batch via block-diagonal matmuls ----
    y = layernorm(x, ln1g, ln1b)                                             # (BS, H)
    h = gelu(jnp.dot(w1, y, preferred_element_type=jnp.float32) + b1)        # (BT, H)
    tm = jnp.dot(w2, h, preferred_element_type=jnp.float32) + b2             # (BS, H)
    tm = tm * se_gate(jnp.mean(tm, axis=-1, keepdims=True))
    x1 = x + tm                                                              # residual 1

    # ---- LN2 + channel mixing (batch stacked in the matmul M dim) ----
    y2 = layernorm(x1, ln2g, ln2b)                                           # (BS, H)
    h2 = gelu(jnp.dot(y2, wc1, preferred_element_type=jnp.float32) + bc1)    # (BS, C)
    cm = jnp.dot(h2, wc2, preferred_element_type=jnp.float32) + bc2          # (BS, H)
    cm = cm * se_gate(jnp.mean(cm, axis=-1, keepdims=True))
    o_ref[...] = x1 + cm                                                     # residual 2


def pack_params(params):
    """Pack all weights/biases (block-diag + pre-broadcast) into one (136,128) slab."""
    (ln1g, ln1b, ln2g, ln2b,
     w1t, b1t, w2t, b2t,
     wc1, bc1, wc2, bc2,
     wse1, wse2) = params

    def blockdiag(a):                         # (m, n) -> (B*m, B*n)
        a = jnp.asarray(a, jnp.float32)
        m, n = a.shape
        out = jnp.zeros((B * m, B * n), jnp.float32)
        for b in range(B):
            out = out.at[b * m:(b + 1) * m, b * n:(b + 1) * n].set(a)
        return out

    slab = jnp.zeros((NROWS, LANES), jnp.float32)

    def put(s, r, c, a):
        a = jnp.asarray(a, jnp.float32)
        return s.at[r:r + a.shape[0], c:c + a.shape[1]].set(a)

    slab = put(slab, R_WC1, C_WC1, wc1)                                     # (H, C)
    slab = put(slab, R_WC2, C_WC2, wc2)                                     # (C, H)
    slab = put(slab, R_W1,  C_W1,  blockdiag(w1t))                          # (BT, BS)
    slab = put(slab, R_W2,  C_W2,  blockdiag(w2t))                          # (BS, BT)
    slab = put(slab, R_B1,  C_B1,  jnp.tile(jnp.broadcast_to(b1t, (T, H)), (B, 1)))
    slab = put(slab, R_B2,  C_B2,  jnp.tile(jnp.broadcast_to(b2t, (S, H)), (B, 1)))
    slab = put(slab, R_BC1, C_BC1, jnp.broadcast_to(bc1, (BS, C)))
    slab = put(slab, R_BC2, C_BC2, jnp.broadcast_to(bc2, (BS, H)))
    slab = put(slab, R_SE1, C_SE1, blockdiag(wse1.T))                       # pre-transposed
    slab = put(slab, R_SE2, C_SE2, blockdiag(wse2))
    slab = put(slab, R_LN1G, 0, ln1g)
    slab = put(slab, R_LN1B, 0, ln1b)
    slab = put(slab, R_LN2G, 0, ln2g)
    slab = put(slab, R_LN2B, 0, ln2b)
    return slab


def mixer_block(x, wslab):
    xf = x.reshape(BS, H)                     # free reshape; H stays on lanes
    out = pl.pallas_call(
        mixer_block_kernel,
        out_shape=jax.ShapeDtypeStruct((BS, H), jnp.float32),
        grid=(1,),
        in_specs=[pl.BlockSpec((BS, H), lambda i: (0, 0)),
                  pl.BlockSpec((NROWS, LANES), lambda i: (0, 0))],
        out_specs=pl.BlockSpec((BS, H), lambda i: (0, 0)),
        compiler_params=pltpu.CompilerParams(dimension_semantics=("arbitrary",)),
    )(xf, wslab)
    return out.reshape(B, S, H)


def reference(x, params):
    """Pure-JAX reference implementing MixerBlock.forward semantics (exact GELU)."""
    (ln1g, ln1b, ln2g, ln2b,
     w1t, b1t, w2t, b2t,
     wc1, bc1, wc2, bc2,
     wse1, wse2) = params

    def ln(v, g, b):
        mu = jnp.mean(v, axis=-1, keepdims=True)
        var = jnp.mean((v - mu) ** 2, axis=-1, keepdims=True)
        return (v - mu) / jnp.sqrt(var + EPS) * g + b

    def gelu(v):
        return 0.5 * v * (1.0 + jax.scipy.special.erf(v / jnp.sqrt(2.0)))

    def se(v):
        pooled = jnp.mean(v, axis=-1)                          # (B, S)
        e = jnp.maximum(pooled @ wse1.T, 0.0)                  # (B, S//R)
        e = jax.nn.sigmoid(e @ wse2.T)                         # (B, S)
        return v * e[..., None]

    y = ln(x, ln1g[0], ln1b[0])
    yT = jnp.swapaxes(y, 1, 2)                                 # (B, H, S)
    yT = gelu(yT @ w1t.T + b1t[:, 0]) @ w2t.T + b2t[:, 0]      # token mixing
    y = jnp.swapaxes(yT, 1, 2)                                 # (B, S, H)
    y = se(y)
    x1 = x + y
    y = ln(x1, ln2g[0], ln2b[0])
    y = gelu(y @ wc1 + bc1[0]) @ wc2 + bc2[0]                  # channel mixing
    y = se(y)
    return x1 + y


def init_params(key):
    ks = jax.random.split(key, 16)
    sc = 0.1
    ln1g = jnp.ones((1, H), jnp.float32) + sc * jax.random.normal(ks[0], (1, H))
    ln1b = sc * jax.random.normal(ks[1], (1, H))
    ln2g = jnp.ones((1, H), jnp.float32) + sc * jax.random.normal(ks[2], (1, H))
    ln2b = sc * jax.random.normal(ks[3], (1, H))
    # token-mixing MLP: fc1 Linear(S->T), fc2 Linear(T->S)  (PyTorch (out,in))
    w1t = sc * jax.random.normal(ks[4], (T, S))
    b1t = sc * jax.random.normal(ks[5], (T, 1))
    w2t = sc * jax.random.normal(ks[6], (S, T))
    b2t = sc * jax.random.normal(ks[7], (S, 1))
    # channel-mixing MLP: fc1 Linear(H->C), fc2 Linear(C->H), stored as (in,out)
    wc1 = sc * jax.random.normal(ks[8], (H, C))
    bc1 = sc * jax.random.normal(ks[9], (1, C))
    wc2 = sc * jax.random.normal(ks[10], (C, H))
    bc2 = sc * jax.random.normal(ks[11], (1, H))
    # SE: Linear(S -> S//R, no bias), Linear(S//R -> S, no bias)  (PyTorch (out,in))
    wse1 = sc * jax.random.normal(ks[12], (S // R, S))
    wse2 = sc * jax.random.normal(ks[13], (S, S // R))
    return tuple(a.astype(jnp.float32) for a in
                 (ln1g, ln1b, ln2g, ln2b, w1t, b1t, w2t, b2t,
                  wc1, bc1, wc2, bc2, wse1, wse2))


if __name__ == "__main__":
    key = jax.random.PRNGKey(0)
    kx, kp = jax.random.split(key)
    x = jax.random.normal(kx, (B, S, H), dtype=jnp.float32)
    params = init_params(kp)
    wslab = pack_params(params)            # packed once, outside the kernel call

    out = jax.block_until_ready(mixer_block(x, wslab))
    ref = jax.block_until_ready(reference(x, params))

    assert out.shape == (B, S, H)
    max_err = jnp.max(jnp.abs(out - ref))
    assert jnp.allclose(out, ref, atol=2e-3, rtol=2e-3), f"max abs diff {max_err}"
    print("KERNEL_OK")
</pallas_src>

<mosaic_0001>
module attributes {stable_mosaic.version = 11 : i64} {
  func.func @mixer_block_kernel(%arg0: i32, %arg1: memref<16x32xf32, #tpu.memory_space<vmem>>, %arg2: memref<136x128xf32, #tpu.memory_space<vmem>>, %arg3: memref<16x32xf32, #tpu.memory_space<vmem>>) attributes {dimension_semantics = [#tpu.dimension_semantics<arbitrary>], iteration_bounds = array<i64: 1>, scalar_prefetch = 0 : i64, scratch_operands = 0 : i64, tpu.core_type = #tpu.core_type<tc>, window_params = [{pipeline_mode = #tpu.pipeline_mode<synchronous>, transform_indices = @transform_0, window_bounds = array<i64: 16, 32>}, {pipeline_mode = #tpu.pipeline_mode<synchronous>, transform_indices = @transform_1, window_bounds = array<i64: 136, 128>}, {pipeline_mode = #tpu.pipeline_mode<synchronous>, transform_indices = @transform_2, window_bounds = array<i64: 16, 32>}]} {
    %c0 = arith.constant 0 : index
    %c0_0 = arith.constant 0 : index
    %0 = vector.load %arg2[%c0, %c0_0] : memref<136x128xf32, #tpu.memory_space<vmem>>, vector<32x64xf32>
    %c0_1 = arith.constant 0 : index
    %c64 = arith.constant 64 : index
    %1 = vector.load %arg2[%c0_1, %c64] : memref<136x128xf32, #tpu.memory_space<vmem>>, vector<32x32xf32>
    %c32 = arith.constant 32 : index
    %c0_2 = arith.constant 0 : index
    %2 = vector.load %arg2[%c32, %c0_2] : memref<136x128xf32, #tpu.memory_space<vmem>>, vector<64x32xf32>
    %c32_3 = arith.constant 32 : index
    %c64_4 = arith.constant 64 : index
    %3 = vector.load %arg2[%c32_3, %c64_4] : memref<136x128xf32, #tpu.memory_space<vmem>>, vector<16x64xf32>
    %c48 = arith.constant 48 : index
    %c64_5 = arith.constant 64 : index
    %4 = vector.load %arg2[%c48, %c64_5] : memref<136x128xf32, #tpu.memory_space<vmem>>, vector<16x32xf32>
    %c64_6 = arith.constant 64 : index
    %c64_7 = arith.constant 64 : index
    %5 = vector.load %arg2[%c64_6, %c64_7] : memref<136x128xf32, #tpu.memory_space<vmem>>, vector<16x32xf32>
    %c80 = arith.constant 80 : index
    %c64_8 = arith.constant 64 : index
    %6 = vector.load %arg2[%c80, %c64_8] : memref<136x128xf32, #tpu.memory_space<vmem>>, vector<16x32xf32>
    %c96 = arith.constant 96 : index
    %c0_9 = arith.constant 0 : index
    %7 = vector.load %arg2[%c96, %c0_9] : memref<136x128xf32, #tpu.memory_space<vmem>>, vector<32x16xf32>
    %c96_10 = arith.constant 96 : index
    %c64_11 = arith.constant 64 : index
    %8 = vector.load %arg2[%c96_10, %c64_11] : memref<136x128xf32, #tpu.memory_space<vmem>>, vector<16x4xf32>
    %c112 = arith.constant 112 : index
    %c64_12 = arith.constant 64 : index
    %9 = vector.load %arg2[%c112, %c64_12] : memref<136x128xf32, #tpu.memory_space<vmem>>, vector<16x4xf32>
    %c128 = arith.constant 128 : index
    %c0_13 = arith.constant 0 : index
    %10 = vector.load %arg2[%c128, %c0_13] : memref<136x128xf32, #tpu.memory_space<vmem>>, vector<1x32xf32>
    %c129 = arith.constant 129 : index
    %c0_14 = arith.constant 0 : index
    %11 = vector.load %arg2[%c129, %c0_14] : memref<136x128xf32, #tpu.memory_space<vmem>>, vector<1x32xf32>
    %c130 = arith.constant 130 : index
    %c0_15 = arith.constant 0 : index
    %12 = vector.load %arg2[%c130, %c0_15] : memref<136x128xf32, #tpu.memory_space<vmem>>, vector<1x32xf32>
    %c131 = arith.constant 131 : index
    %c0_16 = arith.constant 0 : index
    %13 = vector.load %arg2[%c131, %c0_16] : memref<136x128xf32, #tpu.memory_space<vmem>>, vector<1x32xf32>
    %c0_17 = arith.constant 0 : index
    %c0_18 = arith.constant 0 : index
    %14 = vector.load %arg1[%c0_17, %c0_18] : memref<16x32xf32, #tpu.memory_space<vmem>>, vector<16x32xf32>
    %cst = arith.constant dense<0.000000e+00> : vector<16xf32>
    %15 = vector.multi_reduction <add>, %14, %cst [1] : vector<16x32xf32> to vector<16xf32>
    %16 = vector.shape_cast %15 : vector<16xf32> to vector<16x1xf32>
    %cst_19 = arith.constant 3.200000e+01 : f32
    %17 = vector.broadcast %cst_19 : f32 to vector<16x1xf32>
    %18 = arith.divf %16, %17 : vector<16x1xf32>
    %19 = vector.broadcast %18 : vector<16x1xf32> to vector<16x32xf32>
    %20 = arith.subf %14, %19 : vector<16x32xf32>
    %21 = arith.mulf %20, %20 : vector<16x32xf32>
    %cst_20 = arith.constant dense<0.000000e+00> : vector<16xf32>
    %22 = vector.multi_reduction <add>, %21, %cst_20 [1] : vector<16x32xf32> to vector<16xf32>
    %23 = vector.shape_cast %22 : vector<16xf32> to vector<16x1xf32>
    %cst_21 = arith.constant 3.200000e+01 : f32
    %24 = vector.broadcast %cst_21 : f32 to vector<16x1xf32>
    %25 = arith.divf %23, %24 : vector<16x1xf32>
    %cst_22 = arith.constant 9.99999974E-6 : f32
    %26 = vector.broadcast %cst_22 : f32 to vector<16x1xf32>
    %27 = arith.addf %25, %26 : vector<16x1xf32>
    %28 = math.rsqrt %27 : vector<16x1xf32>
    %29 = vector.broadcast %28 : vector<16x1xf32> to vector<16x32xf32>
    %30 = arith.mulf %20, %29 : vector<16x32xf32>
    %31 = vector.broadcast %10 : vector<1x32xf32> to vector<16x32xf32>
    %32 = arith.mulf %30, %31 : vector<16x32xf32>
    %33 = vector.broadcast %11 : vector<1x32xf32> to vector<16x32xf32>
    %34 = arith.addf %32, %33 : vector<16x32xf32>
    %cst_23 = arith.constant dense<0.000000e+00> : vector<32x32xf32>
    %35 = tpu.matmul %7, %34, %cst_23 {dimension_numbers = #tpu.dot_dimension_numbers<[1], [0], [0], [1], [0, 0, 1, 1], [], []>} : vector<32x16xf32>, vector<16x32xf32>, vector<32x32xf32> -> vector<32x32xf32>
    %36 = arith.addf %35, %1 : vector<32x32xf32>
    %cst_24 = arith.constant 5.000000e-01 : f32
    %37 = vector.broadcast %cst_24 : f32 to vector<32x32xf32>
    %38 = arith.mulf %37, %36 : vector<32x32xf32>
    %cst_25 = arith.constant 4.471500e-02 : f32
    %39 = vector.broadcast %cst_25 : f32 to vector<32x32xf32>
    %40 = arith.mulf %39, %36 : vector<32x32xf32>
    %41 = arith.mulf %40, %36 : vector<32x32xf32>
    %42 = arith.mulf %41, %36 : vector<32x32xf32>
    %43 = arith.addf %36, %42 : vector<32x32xf32>
    %cst_26 = arith.constant 0.797884583 : f32
    %44 = vector.broadcast %cst_26 : f32 to vector<32x32xf32>
    %45 = arith.mulf %44, %43 : vector<32x32xf32>
    %46 = math.tanh %45 : vector<32x32xf32>
    %cst_27 = arith.constant 1.000000e+00 : f32
    %47 = vector.broadcast %cst_27 : f32 to vector<32x32xf32>
    %48 = arith.addf %47, %46 : vector<32x32xf32>
    %49 = arith.mulf %38, %48 : vector<32x32xf32>
    %cst_28 = arith.constant dense<0.000000e+00> : vector<16x32xf32>
    %50 = tpu.matmul %6, %49, %cst_28 {dimension_numbers = #tpu.dot_dimension_numbers<[1], [0], [0], [1], [0, 0, 1, 1], [], []>} : vector<16x32xf32>, vector<32x32xf32>, vector<16x32xf32> -> vector<16x32xf32>
    %51 = arith.addf %50, %4 : vector<16x32xf32>
    %cst_29 = arith.constant dense<0.000000e+00> : vector<16xf32>
    %52 = vector.multi_reduction <add>, %51, %cst_29 [1] : vector<16x32xf32> to vector<16xf32>
    %53 = vector.shape_cast %52 : vector<16xf32> to vector<16x1xf32>
    %cst_30 = arith.constant 3.200000e+01 : f32
    %54 = vector.broadcast %cst_30 : f32 to vector<16x1xf32>
    %55 = arith.divf %53, %54 : vector<16x1xf32>
    %56 = vector.broadcast %55 : vector<16x1xf32> to vector<16x4xf32>
    %57 = arith.mulf %8, %56 : vector<16x4xf32>
    %cst_31 = arith.constant dense<0.000000e+00> : vector<4xf32>
    %58 = vector.multi_reduction <add>, %57, %cst_31 [0] : vector<16x4xf32> to vector<4xf32>
    %59 = vector.shape_cast %58 : vector<4xf32> to vector<1x4xf32>
    %cst_32 = arith.constant 0.000000e+00 : f32
    %60 = vector.broadcast %cst_32 : f32 to vector<1x4xf32>
    %61 = arith.maximumf %59, %60 : vector<1x4xf32>
    %62 = vector.broadcast %61 : vector<1x4xf32> to vector<16x4xf32>
    %63 = arith.mulf %9, %62 : vector<16x4xf32>
    %cst_33 = arith.constant dense<0.000000e+00> : vector<16xf32>
    %64 = vector.multi_reduction <add>, %63, %cst_33 [1] : vector<16x4xf32> to vector<16xf32>
    %65 = vector.shape_cast %64 : vector<16xf32> to vector<16x1xf32>
    %cst_34 = arith.constant 5.000000e-01 : f32
    %66 = vector.broadcast %cst_34 : f32 to vector<16x1xf32>
    %67 = arith.mulf %66, %65 : vector<16x1xf32>
    %68 = math.tanh %67 : vector<16x1xf32>
    %cst_35 = arith.constant 1.000000e+00 : f32
    %69 = vector.broadcast %cst_35 : f32 to vector<16x1xf32>
    %70 = arith.addf %69, %68 : vector<16x1xf32>
    %cst_36 = arith.constant 5.000000e-01 : f32
    %71 = vector.broadcast %cst_36 : f32 to vector<16x1xf32>
    %72 = arith.mulf %71, %70 : vector<16x1xf32>
    %73 = vector.broadcast %72 : vector<16x1xf32> to vector<16x32xf32>
    %74 = arith.mulf %51, %73 : vector<16x32xf32>
    %75 = arith.addf %14, %74 : vector<16x32xf32>
    %cst_37 = arith.constant dense<0.000000e+00> : vector<16xf32>
    %76 = vector.multi_reduction <add>, %75, %cst_37 [1] : vector<16x32xf32> to vector<16xf32>
    %77 = vector.shape_cast %76 : vector<16xf32> to vector<16x1xf32>
    %cst_38 = arith.constant 3.200000e+01 : f32
    %78 = vector.broadcast %cst_38 : f32 to vector<16x1xf32>
    %79 = arith.divf %77, %78 : vector<16x1xf32>
    %80 = vector.broadcast %79 : vector<16x1xf32> to vector<16x32xf32>
    %81 = arith.subf %75, %80 : vector<16x32xf32>
    %82 = arith.mulf %81, %81 : vector<16x32xf32>
    %cst_39 = arith.constant dense<0.000000e+00> : vector<16xf32>
    %83 = vector.multi_reduction <add>, %82, %cst_39 [1] : vector<16x32xf32> to vector<16xf32>
    %84 = vector.shape_cast %83 : vector<16xf32> to vector<16x1xf32>
    %cst_40 = arith.constant 3.200000e+01 : f32
    %85 = vector.broadcast %cst_40 : f32 to vector<16x1xf32>
    %86 = arith.divf %84, %85 : vector<16x1xf32>
    %cst_41 = arith.constant 9.99999974E-6 : f32
    %87 = vector.broadcast %cst_41 : f32 to vector<16x1xf32>
    %88 = arith.addf %86, %87 : vector<16x1xf32>
    %89 = math.rsqrt %88 : vector<16x1xf32>
    %90 = vector.broadcast %89 : vector<16x1xf32> to vector<16x32xf32>
    %91 = arith.mulf %81, %90 : vector<16x32xf32>
    %92 = vector.broadcast %12 : vector<1x32xf32> to vector<16x32xf32>
    %93 = arith.mulf %91, %92 : vector<16x32xf32>
    %94 = vector.broadcast %13 : vector<1x32xf32> to vector<16x32xf32>
    %95 = arith.addf %93, %94 : vector<16x32xf32>
    %cst_42 = arith.constant dense<0.000000e+00> : vector<16x64xf32>
    %96 = tpu.matmul %95, %0, %cst_42 {dimension_numbers = #tpu.dot_dimension_numbers<[1], [0], [0], [1], [0, 0, 1, 1], [], []>} : vector<16x32xf32>, vector<32x64xf32>, vector<16x64xf32> -> vector<16x64xf32>
    %97 = arith.addf %96, %3 : vector<16x64xf32>
    %cst_43 = arith.constant 5.000000e-01 : f32
    %98 = vector.broadcast %cst_43 : f32 to vector<16x64xf32>
    %99 = arith.mulf %98, %97 : vector<16x64xf32>
    %cst_44 = arith.constant 4.471500e-02 : f32
    %100 = vector.broadcast %cst_44 : f32 to vector<16x64xf32>
    %101 = arith.mulf %100, %97 : vector<16x64xf32>
    %102 = arith.mulf %101, %97 : vector<16x64xf32>
    %103 = arith.mulf %102, %97 : vector<16x64xf32>
    %104 = arith.addf %97, %103 : vector<16x64xf32>
    %cst_45 = arith.constant 0.797884583 : f32
    %105 = vector.broadcast %cst_45 : f32 to vector<16x64xf32>
    %106 = arith.mulf %105, %104 : vector<16x64xf32>
    %107 = math.tanh %106 : vector<16x64xf32>
    %cst_46 = arith.constant 1.000000e+00 : f32
    %108 = vector.broadcast %cst_46 : f32 to vector<16x64xf32>
    %109 = arith.addf %108, %107 : vector<16x64xf32>
    %110 = arith.mulf %99, %109 : vector<16x64xf32>
    %cst_47 = arith.constant dense<0.000000e+00> : vector<16x32xf32>
    %111 = tpu.matmul %110, %2, %cst_47 {dimension_numbers = #tpu.dot_dimension_numbers<[1], [0], [0], [1], [0, 0, 1, 1], [], []>} : vector<16x64xf32>, vector<64x32xf32>, vector<16x32xf32> -> vector<16x32xf32>
    %112 = arith.addf %111, %5 : vector<16x32xf32>
    %cst_48 = arith.constant dense<0.000000e+00> : vector<16xf32>
    %113 = vector.multi_reduction <add>, %112, %cst_48 [1] : vector<16x32xf32> to vector<16xf32>
    %114 = vector.shape_cast %113 : vector<16xf32> to vector<16x1xf32>
    %cst_49 = arith.constant 3.200000e+01 : f32
    %115 = vector.broadcast %cst_49 : f32 to vector<16x1xf32>
    %116 = arith.divf %114, %115 : vector<16x1xf32>
    %117 = vector.broadcast %116 : vector<16x1xf32> to vector<16x4xf32>
    %118 = arith.mulf %8, %117 : vector<16x4xf32>
    %cst_50 = arith.constant dense<0.000000e+00> : vector<4xf32>
    %119 = vector.multi_reduction <add>, %118, %cst_50 [0] : vector<16x4xf32> to vector<4xf32>
    %120 = vector.shape_cast %119 : vector<4xf32> to vector<1x4xf32>
    %cst_51 = arith.constant 0.000000e+00 : f32
    %121 = vector.broadcast %cst_51 : f32 to vector<1x4xf32>
    %122 = arith.maximumf %120, %121 : vector<1x4xf32>
    %123 = vector.broadcast %122 : vector<1x4xf32> to vector<16x4xf32>
    %124 = arith.mulf %9, %123 : vector<16x4xf32>
    %cst_52 = arith.constant dense<0.000000e+00> : vector<16xf32>
    %125 = vector.multi_reduction <add>, %124, %cst_52 [1] : vector<16x4xf32> to vector<16xf32>
    %126 = vector.shape_cast %125 : vector<16xf32> to vector<16x1xf32>
    %cst_53 = arith.constant 5.000000e-01 : f32
    %127 = vector.broadcast %cst_53 : f32 to vector<16x1xf32>
    %128 = arith.mulf %127, %126 : vector<16x1xf32>
    %129 = math.tanh %128 : vector<16x1xf32>
    %cst_54 = arith.constant 1.000000e+00 : f32
    %130 = vector.broadcast %cst_54 : f32 to vector<16x1xf32>
    %131 = arith.addf %130, %129 : vector<16x1xf32>
    %cst_55 = arith.constant 5.000000e-01 : f32
    %132 = vector.broadcast %cst_55 : f32 to vector<16x1xf32>
    %133 = arith.mulf %132, %131 : vector<16x1xf32>
    %134 = vector.broadcast %133 : vector<16x1xf32> to vector<16x32xf32>
    %135 = arith.mulf %112, %134 : vector<16x32xf32>
    %136 = arith.addf %75, %135 : vector<16x32xf32>
    %c0_56 = arith.constant 0 : index
    %c0_57 = arith.constant 0 : index
    %137 = vector.load %arg3[%c0_56, %c0_57] : memref<16x32xf32, #tpu.memory_space<vmem>>, vector<16x32xf32>
    tpu.vector_store %arg3[%c0_56, %c0_57], %136 {strides = array<i32>} : memref<16x32xf32, #tpu.memory_space<vmem>>, vector<16x32xf32>,
    return
  }
  func.func @transform_0(%arg0: i32) -> (i32, i32) {
    %c0_i32 = arith.constant 0 : i32
    %c0_i32_0 = arith.constant 0 : i32
    %c0_i32_1 = arith.constant 0 : i32
    return %c0_i32, %c0_i32_0 : i32, i32
  }
  func.func @transform_1(%arg0: i32) -> (i32, i32) {
    %c0_i32 = arith.constant 0 : i32
    %c0_i32_0 = arith.constant 0 : i32
    %c0_i32_1 = arith.constant 0 : i32
    return %c0_i32, %c0_i32_0 : i32, i32
  }
  func.func @transform_2(%arg0: i32) -> (i32, i32) {
    %c0_i32 = arith.constant 0 : i32
    %c0_i32_0 = arith.constant 0 : i32
    %c0_i32_1 = arith.constant 0 : i32
    return %c0_i32, %c0_i32_0 : i32, i32
  }
}

</mosaic_0001>

<bundles_post_ra>
// kernel: tpu_custom_call.1
= control target key start
LH: loop header
LB: loop body
LE: loop exit
PB: predicated region body
PF: predicated region fallthrough
CT: control target
= control target key end

     0   :  { %7 = vsyncpa [#allocation3], 0  ;;  %s1046_s0 = inlined_call_operand.hbm [shape: f32[16,32], index: 0, kind: input, shape index: {}]   ;;  %s1047_s1 = inlined_call_operand.hbm [shape: f32[136,128], index: 1, kind: input, shape index: {}]   ;;  %s1048_s2 = inlined_call_operand.hbm [shape: f32[16,32], index: 2, kind: output, shape index: {}]  }
   0x1   :  { %8 = vsyncpa [#allocation6], 0 }
   0x2   :  { %9 = vsyncpa [#allocation4], 0  ;;  %s891_s9 = smov [#allocation2]  }
   0x3   :  { %s15_s10 = sshll.u32 %s891_s9, 4  ;;  %s16_s10 = int_to_ptr.vmem [resolvable:$true] %s15_s10 }
   0x4   :  { %s833_s11 = scalar_lea.vmem %s16_s10, 256  ;;  %p838_p1 = scmp.lt.s32.totalorder %s16_s10, %s16_s10 }
   0x5   :  { %p834_p0 = scmp.ne.s32.totalorder %s16_s10, %s833_s11  ;;  %p839_p2 = scmp.lt.s32.totalorder %s833_s11, %s833_s11 }
   0x7   :  { %p840_p3 = por %p839_p2, %p838_p1 }
   0x9   :  { %p841_p4 = pnand %p840_p3, %p834_p0 }
   0xb   :  { %844 = shalt.err (!%p841_p4)
}
   0xc   :  { %s892_s12 = smov 128   ;;  %s893_s13 = smov 8  }
   0xd   :  { %21 = dma.hbm_to_vmem [thread:$0]  %s1046_s0, 256, %s16_s10, [#allocation3], %s892_s12, %s892_s12, %s893_s13  }
   0xe   :  { %s894_s16 = smov [#allocation5]  }
   0xf   :  { %s27_s17 = sshll.u32 %s894_s16, 4  ;;  %s28_s17 = int_to_ptr.vmem [resolvable:$true] %s27_s17 }
  0x10   :  { %s853_s18 = scalar_lea.vmem %s28_s17, 2176  ;;  %p858_p6 = scmp.lt.s32.totalorder %s28_s17, %s28_s17 }
  0x11   :  { %p854_p5 = scmp.ne.s32.totalorder %s28_s17, %s853_s18  ;;  %p859_p7 = scmp.lt.s32.totalorder %s853_s18, %s853_s18 }
  0x13   :  { %p860_p8 = por %p859_p7, %p858_p6 }
  0x15   :  { %p861_p9 = pnand %p860_p8, %p854_p5 }
  0x17   :  { %864 = shalt.err (!%p861_p9)
}
  0x18   :  { %33 = dma.hbm_to_vmem [thread:$0]  %s1047_s1, 2176, %s28_s17, [#allocation6], %s892_s12, %s892_s12, %s893_s13  }
  0x19   :  { %885 = dma.done.wait [#allocation3], 256  }
  0x1a   :  { %886 = vsyncadd [#allocation3], 4294967040 }
  0x1b   :  { %887 = dma.done.wait [#allocation6], 2176  }
  0x1c   :  { %888 = vsyncadd [#allocation6], 4294965120  ;;  %vm62_vm0 = vcmask 261120   ;;  %v924_v0 = vld [vmem:[#allocation2 + $0x8] sm:$0xff]  ;;  %v926_v1 = vld [vmem:[#allocation2] sm:$0xff]  ;;  %vm118_vm1 = vcmask 130048  }
  0x1d   :  { %v66_v2 = vsel %vm62_vm0, %v924_v0, 0.0  ;;  %v63_v3 = vsel %vm62_vm0, %v926_v1, 0.0  ;;  %v936_v14 = vld [vmem:[#allocation5 + $0x60] sm:$0xff]  ;;  %v940_v15 = vld [vmem:[#allocation5 + $0x10] sm:$0xff]  ;;  %s895_s0 = smov 64   ;;  %v944_v16 = vld [vmem:[#allocation5 + $0x18] sm:$0xff] }
  0x1e   :  { %67 = vadd.xlane.f32.xlu0 %v66_v2  ;;  %744 = vmatprep.mubr.msk.f32.mxu0 %vm118_vm1, %v936_v14  ;;  %v51_v17 = vld [vmem:[#allocation5 + $0x58] sm:$0xff]  ;;  %v946_v18 = vld [vmem:[#allocation5 + $0x8] sm:$0xff]  ;;  %v50_v19 = vld [vmem:[#allocation5 + $0x50] sm:$0xff]  ;;  %vm355_vm2 = vcmask 556544   ;;  %vm376_vm3 = vcmask 31744   ;;  %vm548_vm4 = vcmask 523264  }
  0x1f   :  { %772 = vmatprep.subr.mxu1 %v51_v17  ;;  %v952_v20 = vld [vmem:[#allocation5] sm:$0xff]  ;;  %v958_v37 = vld [vmem:[#allocation5 + $0x68] sm:$0xff]  ;;  %v960_v38 = vld [vmem:[#allocation5 + $0x70] sm:$0xff]  ;;  %s896_s1 = smov [#allocation7]  }
  0x20   :  { %773 = vmatpush3.msra.mxu1 %v51_v17  ;;  %v698_v28 = vld [vmem:[#allocation5 + $0x80] ss:$0 sm:$0xff]  ;;  %v699_v30 = vld [vmem:[#allocation5 + $0x81] ss:$0 sm:$0xff]  ;;  %v966_v39 = vld [vmem:[#allocation5 + $0x78] sm:$0xff]  ;;  %s685_s21 = sshll.u32 %s896_s1, 4  ;;  %s686_s21 = int_to_ptr.vmem [resolvable:$true] %s685_s21 }
  0x21   :  { %774 = vmatprep.subr.mxu1 %v50_v19  ;;  %v971_v42 = vld [vmem:[#allocation5 + $0x38] sm:$0xff]  ;;  %v973_v43 = vld [vmem:[#allocation5 + $0x30] sm:$0xff]  ;;  %s865_s22 = scalar_lea.vmem %s686_s21, 256  ;;  %p870_p11 = scmp.lt.s32.totalorder %s686_s21, %s686_s21 }
  0x22   :  { %64 = vadd.xlane.f32.xlu0 %v63_v3  ;;  %775 = vmatpush3.msra.mxu1 %v50_v19  ;;  %p866_p10 = scmp.ne.s32.totalorder %s686_s21, %s865_s22  ;;  %p871_p12 = scmp.lt.s32.totalorder %s865_s22, %s865_s22 }
  0x24   :  { %p872_p13 = por %p871_p12, %p870_p11 }
  0x26   :  { %p873_p0 = pnand %p872_p13, %p866_p10 }
  0x38   :  { %112 = vrot.lane.b32.xlu0 %v944_v16, %s895_s0 }
  0x3c   :  { %254 = vrot.lane.b32.xlu0 %v50_v19, %s895_s0 }
  0x40   :  { %260 = vrot.lane.b32.xlu0 %v973_v43, %s895_s0 }
  0xa7   :  { %v68_v4 = vpop.xlane.xlu0 %67 }
  0xa8   :  { %v71_v5 = vmul.f32 0.03125, %v68_v4 }
  0xaa   :  { %v73_v6 = vsub.f32 %v924_v0, %v71_v5 }
  0xab   :  { %v65_v7 = vpop.xlane.xlu0 %64 }
  0xac   :  { %v70_v8 = vmul.f32 0.03125, %v65_v7  ;;  %v75_v9 = vmul.f32 %v73_v6, %v73_v6 }
  0xae   :  { %v72_v10 = vsub.f32 %v926_v1, %v70_v8  ;;  %v79_v11 = vsel %vm62_vm0, %v75_v9, 0.0 }
  0xaf   :  { %80 = vadd.xlane.f32.xlu1 %v79_v11  ;;  %v113_v40 = vpop.permute.xlu0 %112 }
  0xb0   :  { %v74_v12 = vmul.f32 %v72_v10, %v72_v10 }
  0xb2   :  { %v76_v13 = vsel %vm62_vm0, %v74_v12, 0.0 }
  0xb3   :  { %77 = vadd.xlane.f32.xlu1 %v76_v13  ;;  %v255_v41 = vpop.permute.xlu0 %254 }
  0xc4   :  { %110 = vrot.lane.b32.xlu1 %v940_v15, %s895_s0 }
  0xc8   :  { %108 = vrot.lane.b32.xlu1 %v946_v18, %s895_s0 }
  0xcc   :  { %106 = vrot.lane.b32.xlu1 %v952_v20, %s895_s0 }
  0xd0   :  { %256 = vrot.lane.b32.xlu1 %v51_v17, %s895_s0 }
  0xd4   :  { %262 = vrot.lane.b32.xlu1 %v971_v42, %s895_s0 }
 0x138   :  { %v81_v21 = vpop.xlane.xlu1 %80 }
 0x139   :  { %v83_v22 = vmul.f32 0.03125, %v81_v21 }
 0x13b   :  { %v85_v23 = vadd.f32 1e-05, %v83_v22 }
 0x13c   :  { %v78_v24 = vpop.xlane.xlu1 %77 }
 0x13d   :  { %797 = vrsqrt.f32 %v85_v23  ;;  %v82_v25 = vmul.f32 0.03125, %v78_v24 }
 0x13f   :  { %v84_v26 = vadd.f32 1e-05, %v82_v25 }
 0x140   :  { %v111_v44 = vpop.permute.xlu1 %110 }
 0x141   :  { %799 = vrsqrt.f32 %v84_v26 }
 0x144   :  { %v109_v45 = vpop.permute.xlu1 %108 }
 0x148   :  { %v107_v47 = vpop.permute.xlu1 %106 }
 0x14a   :  { %v798_v27 = vpop.eup %797 }
 0x14b   :  { %v89_v29 = vmul.f32 %v798_v27, %v73_v6 }
 0x14d   :  { %v95_v31 = vmul.f32 %v698_v28, %v89_v29 }
 0x14e   :  { %v800_v32 = vpop.eup %799 }
 0x14f   :  { %v88_v33 = vmul.f32 %v800_v32, %v72_v10  ;;  %v101_v34 = vadd.f32 %v699_v30, %v95_v31 }
 0x151   :  { %v94_v35 = vmul.f32 %v698_v28, %v88_v33  ;;  %740 = vmatprep.subr.mxu0 %v101_v34 }
 0x152   :  { %741 = vmatpush3.msra.mxu0 %v101_v34  ;;  %v257_v34 = vpop.permute.xlu1 %256 }
 0x153   :  { %v100_v36 = vadd.f32 %v699_v30, %v94_v35 }
 0x155   :  { %742 = vmatprep.subr.mxu0 %v100_v36 }
 0x156   :  { %743 = vmatpush3.msra.mxu0 %v100_v36  ;;  %v263_v35 = vpop.permute.xlu1 %262 }
 0x157   :  { %745 = vmatmul.mubr.msk.f32.vlgmr.msra.gmra.mxu0 %vm118_vm1, %v958_v37 }
 0x158   :  { %747 = vmatprep.mubr.msk.f32.mxu0 %vm118_vm1, %v960_v38 }
 0x15b   :  { %748 = vmatmul.mubr.msk.f32.gmra.mxu0 %vm118_vm1, %v966_v39 }
 0x15c   :  { %758 = vmatprep.mubr.msk.f32.mxu0 %vm62_vm0, %v255_v41 }
 0x217   :  { %v746_v46 = vpop.f32.mrf.mxu0 }
 0x218   :  { %v203_v48 = vadd.f32 %v746_v46, %v109_v45 }
 0x219   :  { %v197_v49 = vpop.f32.mrf.mxu0 }
 0x21a   :  { %v221_v50 = vmul.f32 0.044715, %v203_v48  ;;  %v198_v51 = vadd.f32 %v197_v49, %v107_v47  ;;  %v217_v29 = vmul.f32 0.5, %v203_v48 }
 0x21b   :  { %v749_v52 = vpop.f32.mrf.mxu0 }
 0x21c   :  { %v225_v53 = vmul.f32 %v221_v50, %v203_v48  ;;  %v220_v54 = vmul.f32 0.044715, %v198_v51  ;;  %v213_v55 = vadd.f32 %v749_v52, %v113_v40  ;;  %v216_v32 = vmul.f32 0.5, %v198_v51  ;;  %v261_v40 = vpop.permute.xlu0 %260 }
 0x21d   :  { %v207_v56 = vpop.f32.mrf.mxu0 }
 0x21e   :  { %v224_v57 = vmul.f32 %v220_v54, %v198_v51  ;;  %v223_v58 = vmul.f32 0.044715, %v213_v55  ;;  %v208_v59 = vadd.f32 %v207_v56, %v111_v44  ;;  %v229_v60 = vmul.f32 %v225_v53, %v203_v48 }
 0x21f   :  { %v219_v21 = vmul.f32 0.5, %v213_v55 }
 0x220   :  { %v227_v61 = vmul.f32 %v223_v58, %v213_v55  ;;  %v222_v62 = vmul.f32 0.044715, %v208_v59  ;;  %v228_v63 = vmul.f32 %v224_v57, %v198_v51  ;;  %v233_v2 = vadd.f32 %v229_v60, %v203_v48 }
 0x221   :  { %v218_v25 = vmul.f32 0.5, %v208_v59 }
 0x222   :  { %v226_v3 = vmul.f32 %v222_v62, %v208_v59  ;;  %v231_v4 = vmul.f32 %v227_v61, %v213_v55  ;;  %v232_v5 = vadd.f32 %v228_v63, %v198_v51  ;;  %v237_v6 = vmul.f32 0.7978846, %v233_v2 }
 0x224   :  { %v235_v7 = vadd.f32 %v231_v4, %v213_v55  ;;  %v230_v8 = vmul.f32 %v226_v3, %v208_v59  ;;  %v236_v9 = vmul.f32 0.7978846, %v232_v5  ;;  %801 = vtanh.f32 %v237_v6 }
 0x226   :  { %v239_v10 = vmul.f32 0.7978846, %v235_v7  ;;  %v234_v11 = vadd.f32 %v230_v8, %v208_v59 }
 0x228   :  { %803 = vtanh.f32 %v239_v10  ;;  %v238_v12 = vmul.f32 0.7978846, %v234_v11 }
 0x229   :  { %805 = vtanh.f32 %v236_v9 }
 0x22a   :  { %807 = vtanh.f32 %v238_v12 }
 0x231   :  { %v802_v13 = vpop.eup %801 }
 0x232   :  { %v245_v27 = vadd.f32 1.0, %v802_v13 }
 0x234   :  { %v249_v31 = vmul.f32 %v245_v27, %v217_v29 }
 0x235   :  { %v804_v17 = vpop.eup %803 }
 0x236   :  { %v806_v19 = vpop.eup %805  ;;  %v247_v22 = vadd.f32 1.0, %v804_v17 }
 0x237   :  { %v808_v23 = vpop.eup %807  ;;  %v244_v30 = vadd.f32 1.0, %v806_v19 }
 0x238   :  { %v251_v24 = vmul.f32 %v247_v22, %v219_v21  ;;  %v246_v26 = vadd.f32 1.0, %v808_v23 }
 0x239   :  { %v248_v33 = vmul.f32 %v244_v30, %v216_v32 }
 0x23a   :  { %750 = vmatprep.subr.mxu0 %v251_v24  ;;  %v250_v28 = vmul.f32 %v246_v26, %v218_v25 }
 0x23b   :  { %751 = vmatpush3.msra.mxu0 %v251_v24 }
 0x23c   :  { %752 = vmatprep.subr.mxu0 %v250_v28 }
 0x23d   :  { %753 = vmatpush3.msra.mxu0 %v250_v28 }
 0x23e   :  { %754 = vmatprep.subr.mxu0 %v249_v31 }
 0x23f   :  { %755 = vmatpush3.msra.mxu0 %v249_v31 }
 0x240   :  { %756 = vmatprep.subr.mxu0 %v248_v33 }
 0x241   :  { %757 = vmatpush3.msra.mxu0 %v248_v33  ;;  %v45_v33 = vld [vmem:[#allocation5 + $0x28] sm:$0xff] }
 0x242   :  { %759 = vmatmul.mubr.msk.f32.vlgmr.msra.gmra.mxu0 %vm62_vm0, %v257_v34  ;;  %761 = vmatprep.subr.mxu0 %v944_v16  ;;  %v44_v34 = vld [vmem:[#allocation5 + $0x20] sm:$0xff] }
 0x243   :  { %762 = vmatpush3.msra.mxu0 %v944_v16 }
 0x244   :  { %763 = vmatprep.subr.mxu0 %v940_v15 }
 0x245   :  { %764 = vmatpush3.msra.mxu0 %v940_v15 }
 0x246   :  { %765 = vmatprep.subr.mxu0 %v946_v18 }
 0x247   :  { %766 = vmatpush3.msra.mxu0 %v946_v18 }
 0x248   :  { %767 = vmatprep.subr.mxu0 %v952_v20 }
 0x249   :  { %768 = vmatpush3.msra.mxu0 %v952_v20 }
 0x302   :  { %v760_v36 = vpop.f32.mrf.mxu0 }
 0x303   :  { %v342_v41 = vadd.f32 %v760_v36, %v263_v35 }
 0x304   :  { %v336_v44 = vpop.f32.mrf.mxu0 }
 0x305   :  { %v337_v45 = vadd.f32 %v336_v44, %v261_v40  ;;  %v348_v16 = vsel %vm62_vm0, %v342_v41, 0.0 }
 0x306   :  { %349 = vadd.xlane.f32.xlu1 %v348_v16 }
 0x307   :  { %v345_v46 = vsel %vm62_vm0, %v337_v45, 0.0 }
 0x308   :  { %346 = vadd.xlane.f32.xlu0 %v345_v46  ;;  %v706_v46 = vld [vmem:[#allocation5 + $0x82] ss:$0 sm:$0xff] }
 0x38f   :  { %v350_v15 = vpop.xlane.xlu1 %349 }
 0x390   :  { %v352_v47 = vmul.f32 0.03125, %v350_v15 }
 0x391   :  { %v347_v48 = vpop.xlane.xlu0 %346 }
 0x392   :  { %v354_v18 = vmul.f32 %v352_v47, %v958_v37  ;;  %v351_v49 = vmul.f32 0.03125, %v347_v48  ;;  %v707_v47 = vld [vmem:[#allocation5 + $0x83] ss:$0 sm:$0xff] }
 0x394   :  { %v353_v20 = vmul.f32 %v351_v49, %v936_v14  ;;  %v357_v50 = vsel %vm355_vm2, %v354_v18, 0.0 }
 0x396   :  { %v356_v51 = vsel %vm355_vm2, %v353_v20, 0.0 }
 0x397   :  { %v358_v52 = vadd.f32 %v357_v50, %v356_v51 }
 0x399   :  { %v359_v53 = vrot.slane %v358_v52, 4 }
 0x39b   :  { %v360_v54 = vadd.f32 %v359_v53, %v358_v52  ;;  %v49_v52 = vld [vmem:[#allocation5 + $0x48] sm:$0xff]  ;;  %v48_v53 = vld [vmem:[#allocation5 + $0x40] sm:$0xff] }
 0x39c   :  { %776 = vmatprep.subr.mxu1 %v49_v52 }
 0x39d   :  { %v361_v55 = vrot.slane %v360_v54, 2  ;;  %777 = vmatpush3.msra.mxu1 %v49_v52 }
 0x39e   :  { %778 = vmatprep.subr.mxu1 %v48_v53 }
 0x39f   :  { %v362_v56 = vadd.f32 %v361_v55, %v360_v54  ;;  %779 = vmatpush3.msra.mxu1 %v48_v53 }
 0x3a0   :  { %780 = vmatprep.subr.mxu1 %v971_v42 }
 0x3a1   :  { %v363_v57 = vrot.slane %v362_v56, 1  ;;  %781 = vmatpush3.msra.mxu1 %v971_v42 }
 0x3a2   :  { %782 = vmatprep.subr.mxu1 %v973_v43 }
 0x3a3   :  { %v364_v58 = vadd.f32 %v363_v57, %v362_v56  ;;  %783 = vmatpush3.msra.mxu1 %v973_v43 }
 0x3a4   :  { %784 = vmatprep.subr.mxu1 %v45_v33 }
 0x3a5   :  { %v365_v59 = vmax.f32 %v364_v58, 0.0  ;;  %785 = vmatpush3.msra.mxu1 %v45_v33 }
 0x3a6   :  { %786 = vmatprep.subr.mxu1 %v44_v34 }
 0x3a7   :  { %v367_v60 = vmul.f32 %v365_v59, %v966_v39  ;;  %v366_v61 = vmul.f32 %v365_v59, %v960_v38  ;;  %787 = vmatpush3.msra.mxu1 %v44_v34 }
 0x3a9   :  { %372 = vrot.lane.b32.xlu1 %v367_v60, %s895_s0  ;;  %370 = vrot.lane.b32.xlu0 %v366_v61, %s895_s0 }
 0x41b   :  { %v373_v62 = vpop.permute.xlu1 %372  ;;  %v371_v63 = vpop.permute.xlu0 %370 }
 0x41c   :  { %v380_v2 = vsel %vm376_vm3, %v373_v62, 0.0  ;;  %v377_v3 = vsel %vm376_vm3, %v371_v63, 0.0 }
 0x41d   :  { %381 = vadd.xlane.f32.xlu1 %v380_v2  ;;  %378 = vadd.xlane.f32.xlu0 %v377_v3 }
 0x4a6   :  { %v382_v4 = vpop.xlane.xlu1 %381  ;;  %v379_v5 = vpop.xlane.xlu0 %378 }
 0x4a7   :  { %v384_v6 = vmul.f32 0.5, %v382_v4  ;;  %v383_v7 = vmul.f32 0.5, %v379_v5 }
 0x4a9   :  { %809 = vtanh.f32 %v384_v6 }
 0x4aa   :  { %811 = vtanh.f32 %v383_v7 }
 0x4b6   :  { %v810_v8 = vpop.eup %809 }
 0x4b7   :  { %v812_v9 = vpop.eup %811  ;;  %v388_v10 = vadd.f32 1.0, %v810_v8 }
 0x4b8   :  { %v387_v11 = vadd.f32 1.0, %v812_v9 }
 0x4b9   :  { %v390_v12 = vmul.f32 0.5, %v388_v10 }
 0x4ba   :  { %v389_v13 = vmul.f32 0.5, %v387_v11 }
 0x4bb   :  { %v392_v19 = vmul.f32 %v390_v12, %v342_v41 }
 0x4bc   :  { %v391_v17 = vmul.f32 %v389_v13, %v337_v45 }
 0x4bd   :  { %v1006_v23 = vadd.f32 %v392_v19, %v924_v0 }
 0x4be   :  { %v1001_v21 = vadd.f32 %v391_v17, %v926_v1 }
 0x4bf   :  { %v398_v24 = vsel %vm62_vm0, %v1006_v23, 0.0 }
 0x4c0   :  { %v395_v22 = vsel %vm62_vm0, %v1001_v21, 0.0 }
 0x4c1   :  { %396 = vadd.xlane.f32.xlu0 %v395_v22 }
 0x4c5   :  { %399 = vadd.xlane.f32.xlu0 %v398_v24 }
 0x54a   :  { %v397_v25 = vpop.xlane.xlu0 %396 }
 0x54b   :  { %v401_v26 = vmul.f32 0.03125, %v397_v25 }
 0x54d   :  { %v403_v27 = vsub.f32 %v1001_v21, %v401_v26 }
 0x54e   :  { %v400_v28 = vpop.xlane.xlu0 %399 }
 0x54f   :  { %v402_v29 = vmul.f32 0.03125, %v400_v28  ;;  %v405_v30 = vmul.f32 %v403_v27, %v403_v27 }
 0x551   :  { %v404_v1 = vsub.f32 %v1006_v23, %v402_v29  ;;  %v407_v31 = vsel %vm62_vm0, %v405_v30, 0.0 }
 0x552   :  { %408 = vadd.xlane.f32.xlu0 %v407_v31 }
 0x553   :  { %v406_v32 = vmul.f32 %v404_v1, %v404_v1 }
 0x555   :  { %v410_v0 = vsel %vm62_vm0, %v406_v32, 0.0 }
 0x556   :  { %411 = vadd.xlane.f32.xlu1 %v410_v0 }
 0x567   :  { %437 = vrot.lane.b32.xlu1 %v45_v33, %s895_s0 }
 0x568   :  { %435 = vrot.lane.b32.xlu0 %v44_v34, %s895_s0 }
 0x56b   :  { %542 = vrot.lane.b32.xlu1 %v48_v53, %s895_s0 }
 0x56f   :  { %544 = vrot.lane.b32.xlu1 %v49_v52, %s895_s0 }
 0x5db   :  { %v409_v35 = vpop.xlane.xlu0 %408 }
 0x5dc   :  { %v413_v36 = vmul.f32 0.03125, %v409_v35 }
 0x5de   :  { %v415_v40 = vadd.f32 1e-05, %v413_v36 }
 0x5df   :  { %v412_v41 = vpop.xlane.xlu1 %411  ;;  %v436_v56 = vpop.permute.xlu0 %435 }
 0x5e0   :  { %813 = vrsqrt.f32 %v415_v40  ;;  %v414_v44 = vmul.f32 0.03125, %v412_v41 }
 0x5e2   :  { %v416_v45 = vadd.f32 1e-05, %v414_v44 }
 0x5e3   :  { %v438_v54 = vpop.permute.xlu1 %437 }
 0x5e4   :  { %815 = vrsqrt.f32 %v416_v45 }
 0x5e7   :  { %v543_v17 = vpop.permute.xlu1 %542 }
 0x5eb   :  { %v545_v19 = vpop.permute.xlu1 %544 }
 0x5ed   :  { %v814_v16 = vpop.eup %813 }
 0x5ee   :  { %v419_v15 = vmul.f32 %v814_v16, %v403_v27 }
 0x5f0   :  { %v425_v48 = vmul.f32 %v706_v46, %v419_v15 }
 0x5f1   :  { %v816_v18 = vpop.eup %815 }
 0x5f2   :  { %v420_v49 = vmul.f32 %v816_v18, %v404_v1  ;;  %v431_v20 = vadd.f32 %v707_v47, %v425_v48 }
 0x5f4   :  { %v426_v50 = vmul.f32 %v706_v46, %v420_v49  ;;  %769 = vmatprep.mubr.msk.f32.mxu0 %vm62_vm0, %v431_v20 }
 0x5f6   :  { %v432_v51 = vadd.f32 %v707_v47, %v426_v50 }
 0x5f8   :  { %770 = vmatmul.mubr.msk.f32.vlgmr.msra.gmra.mxu0 %vm62_vm0, %v432_v51 }
 0x6b8   :  { %v771_v55 = vpop.f32.mrf.mxu0 }
 0x6b9   :  { %v519_v57 = vadd.f32 %v771_v55, %v438_v54 }
 0x6ba   :  { %v513_v58 = vpop.f32.mrf.mxu0 }
 0x6bb   :  { %v525_v59 = vmul.f32 0.044715, %v519_v57  ;;  %v514_v60 = vadd.f32 %v513_v58, %v436_v56  ;;  %v523_v11 = vmul.f32 0.5, %v519_v57 }
 0x6bd   :  { %v527_v61 = vmul.f32 %v525_v59, %v519_v57  ;;  %v524_v62 = vmul.f32 0.044715, %v514_v60  ;;  %v522_v9 = vmul.f32 0.5, %v514_v60 }
 0x6bf   :  { %v529_v63 = vmul.f32 %v527_v61, %v519_v57  ;;  %v526_v2 = vmul.f32 %v524_v62, %v514_v60 }
 0x6c1   :  { %v531_v42 = vadd.f32 %v529_v63, %v519_v57  ;;  %v528_v3 = vmul.f32 %v526_v2, %v514_v60 }
 0x6c3   :  { %v530_v4 = vadd.f32 %v528_v3, %v514_v60  ;;  %v533_v5 = vmul.f32 0.7978846, %v531_v42 }
 0x6c5   :  { %v532_v43 = vmul.f32 0.7978846, %v530_v4  ;;  %817 = vtanh.f32 %v533_v5 }
 0x6c7   :  { %819 = vtanh.f32 %v532_v43 }
 0x6d2   :  { %v818_v6 = vpop.eup %817 }
 0x6d3   :  { %v537_v8 = vadd.f32 1.0, %v818_v6 }
 0x6d4   :  { %v820_v7 = vpop.eup %819 }
 0x6d5   :  { %v536_v10 = vadd.f32 1.0, %v820_v7  ;;  %v539_v13 = vmul.f32 %v537_v8, %v523_v11 }
 0x6d7   :  { %v538_v12 = vmul.f32 %v536_v10, %v522_v9 }
 0x6d9   :  { %788 = vmatprep.mubr.msk.f32.mxu1 %vm548_vm4, %v538_v12 }
 0x6da   :  { %789 = vmatmul.mubr.msk.f32.vlgmr.msra.gmra.mxu1 %vm548_vm4, %v539_v13 }
 0x79a   :  { %v790_v22 = vpop.f32.mrf.mxu1 }
 0x79b   :  { %v627_v24 = vadd.f32 %v790_v22, %v545_v19 }
 0x79c   :  { %v621_v25 = vpop.f32.mrf.mxu1 }
 0x79d   :  { %v622_v26 = vadd.f32 %v621_v25, %v543_v17  ;;  %v633_v27 = vsel %vm62_vm0, %v627_v24, 0.0 }
 0x79e   :  { %634 = vadd.xlane.f32.xlu1 %v633_v27 }
 0x79f   :  { %v630_v28 = vsel %vm62_vm0, %v622_v26, 0.0 }
 0x7a0   :  { %631 = vadd.xlane.f32.xlu0 %v630_v28 }
 0x827   :  { %v635_v29 = vpop.xlane.xlu1 %634 }
 0x828   :  { %v637_v30 = vmul.f32 0.03125, %v635_v29 }
 0x829   :  { %v632_v1 = vpop.xlane.xlu0 %631 }
 0x82a   :  { %v639_v31 = vmul.f32 %v637_v30, %v958_v37  ;;  %v636_v32 = vmul.f32 0.03125, %v632_v1 }
 0x82c   :  { %v638_v0 = vmul.f32 %v636_v32, %v936_v14  ;;  %v641_v33 = vsel %vm355_vm2, %v639_v31, 0.0 }
 0x82e   :  { %v640_v34 = vsel %vm355_vm2, %v638_v0, 0.0 }
 0x82f   :  { %v642_v35 = vadd.f32 %v641_v33, %v640_v34 }
 0x831   :  { %v643_v36 = vrot.slane %v642_v35, 4 }
 0x833   :  { %v644_v40 = vadd.f32 %v643_v36, %v642_v35 }
 0x835   :  { %v645_v41 = vrot.slane %v644_v40, 2 }
 0x837   :  { %v646_v44 = vadd.f32 %v645_v41, %v644_v40 }
 0x839   :  { %v647_v45 = vrot.slane %v646_v44, 1 }
 0x83b   :  { %v648_v16 = vadd.f32 %v647_v45, %v646_v44 }
 0x83d   :  { %v649_v46 = vmax.f32 %v648_v16, 0.0 }
 0x83f   :  { %v651_v15 = vmul.f32 %v649_v46, %v966_v39  ;;  %v650_v47 = vmul.f32 %v649_v46, %v960_v38 }
 0x841   :  { %656 = vrot.lane.b32.xlu1 %v651_v15, %s895_s0  ;;  %654 = vrot.lane.b32.xlu0 %v650_v47, %s895_s0 }
 0x8b3   :  { %v657_v14 = vpop.permute.xlu1 %656  ;;  %v655_v37 = vpop.permute.xlu0 %654 }
 0x8b4   :  { %v663_v48 = vsel %vm376_vm3, %v657_v14, 0.0  ;;  %v660_v18 = vsel %vm376_vm3, %v655_v37, 0.0 }
 0x8b5   :  { %664 = vadd.xlane.f32.xlu1 %v663_v48  ;;  %661 = vadd.xlane.f32.xlu0 %v660_v18 }
 0x93e   :  { %v665_v49 = vpop.xlane.xlu1 %664  ;;  %v662_v20 = vpop.xlane.xlu0 %661 }
 0x93f   :  { %v667_v50 = vmul.f32 0.5, %v665_v49  ;;  %v666_v51 = vmul.f32 0.5, %v662_v20 }
 0x941   :  { %821 = vtanh.f32 %v667_v50 }
 0x942   :  { %823 = vtanh.f32 %v666_v51 }
 0x94e   :  { %v822_v39 = vpop.eup %821 }
 0x94f   :  { %v824_v38 = vpop.eup %823  ;;  %v671_v52 = vadd.f32 1.0, %v822_v39 }
 0x950   :  { %v670_v53 = vadd.f32 1.0, %v824_v38 }
 0x951   :  { %v673_v54 = vmul.f32 0.5, %v671_v52 }
 0x952   :  { %v672_v55 = vmul.f32 0.5, %v670_v53 }
 0x953   :  { %v675_v56 = vmul.f32 %v673_v54, %v627_v24 }
 0x954   :  { %v674_v57 = vmul.f32 %v672_v55, %v622_v26 }
 0x955   :  { %v677_v58 = vadd.f32 %v675_v56, %v1006_v23 }
 0x956   :  { %v676_v59 = vadd.f32 %v674_v57, %v1001_v21 }
 0x957   :  { %679 = vst.msk [vmem:[#allocation7 + $0x8] sm:$0xff] %vm62_vm0, %v677_v58 }
 0x958   :  { %678 = vst.msk [vmem:[#allocation7] sm:$0xff] %vm62_vm0, %v676_v59 }
 0x959   :  { %876 = shalt.err (!%p873_p0)
}
 0x95a   :  { %691 = dma.vmem_to_hbm [thread:$0]  %s686_s21, 256, %s1048_s2, [#allocation4], %s892_s12, %s892_s12, %s893_s13  }
 0x95b   :  { %889 = dma.done.wait [#allocation4], 256  }
 0x95c   :  { %890 = vsyncadd [#allocation4], 4294967040 }
 0x95d   :  { %695 = vsyncpa [#allocation3], 1 }
 0x95e   :  { %696 = vsyncpa [#allocation6], 1 }
 0x95f   :  { %697 = vsyncpa [#allocation4], 1 }

</bundles_post_ra>
